<compile_context>
chip_gen: v6e
topology: v6e:2x2x1
jax: 0.10.0
libtpu: 0.0.40
codegen_flags: <defaults>
</compile_context>

<pallas_src>
import math

import jax
import jax.numpy as jnp
from jax import lax
from jax.experimental import pallas as pl
from jax.experimental.pallas import tpu as pltpu


def _round_up(n: int, m: int) -> int:
    return (n + m - 1) // m * m


def make_dcn_kernel(num_cross: int, dense_out_dims, num_features: int,
                    n_chunks: int, chunk: int):
    """Build the fused DCN forward kernel for fixed layer counts/dims."""
    dense_out_dims = tuple(int(d) for d in dense_out_dims)
    num_dense = len(dense_out_dims)
    dims = (int(num_features),) + dense_out_dims
    deep_out = dims[-1]
    D = int(num_features)

    def kernel(x_ref, cw_ref, cb_ref, dw_ref, db_ref, fin_ref, out_ref):
        # Identity (bf16) used to transpose the natural-layout x chunk on the
        # MXU: x0^T = eye @ x^T  (contract-on-last-dims dot_general).
        rows = lax.broadcasted_iota(jnp.int32, (D, D), 0)
        cols = lax.broadcasted_iota(jnp.int32, (D, D), 1)
        eye = jnp.where(rows == cols, 1.0, 0.0).astype(jnp.bfloat16)

        def chunk_body(c, carry):
            off = pl.multiple_of(c * chunk, chunk)
            xc = x_ref[pl.ds(off, chunk), :]            # (chunk, D) bf16, contiguous slab

            # Transposed activations (batch on lanes): MXU, not XLU/VALU.
            x0t = lax.dot_general(eye, xc, (((1,), (1,)), ((), ())),
                                  preferred_element_type=jnp.float32)   # (D, chunk) f32

            # ---- Cross network: x_{l+1} = x0 * (w_l . x_l) + b_l + x_l ------
            # TODO(synk): the PyTorch reference does `cross.view(B,-1) @ weight`,
            # a shape mismatch for input_dim > 1; we implement the intended
            # DCN-v1 cross term x0*(x_l^T w) + b + x_l (matches the JAX ref).
            xlt = x0t
            for l in range(num_cross):
                w = cw_ref[l]                                        # (1, D) lane-major
                b = cb_ref[l]                                        # (D, 1)
                xlw = jnp.dot(w, xlt, preferred_element_type=jnp.float32)  # (1, chunk) MXU
                xlt = x0t * xlw + b + xlt

            # ---- Deep network: Linear -> ReLU (no activation on last layer) --
            # TODO(synk): dropout_rate defaults to 0.0 (identity); dropout omitted.
            if num_dense == 0:
                ht = x0t
            else:
                d1 = dims[1]
                w1 = dw_ref[0, 0:d1, 0:D]                            # (d1, D) bf16
                b1 = db_ref[0, 0:d1, :]                              # (d1, 1) f32
                # First layer folds the transpose: W1 @ x0^T from the natural tile.
                ht = lax.dot_general(w1, xc, (((1,), (1,)), ((), ())),
                                     preferred_element_type=jnp.float32) + b1
                if num_dense > 1:
                    ht = jnp.maximum(ht, 0.0)
                for i in range(1, num_dense):
                    din, dout = dims[i], dims[i + 1]
                    wi = dw_ref[i, 0:dout, 0:din]                    # (dout, din) bf16
                    bi = db_ref[i, 0:dout, :]                        # (dout, 1) f32
                    ht = jnp.dot(wi, ht.astype(jnp.bfloat16),
                                 preferred_element_type=jnp.float32) + bi
                    if i < num_dense - 1:
                        ht = jnp.maximum(ht, 0.0)

            # ---- Final layer on concat([cross, deep]) == two split dots ------
            wc = fin_ref[0, :, 0:D]                                  # (1, D)
            wd = fin_ref[1, :, 0:deep_out]                           # (1, deep_out)
            bf = fin_ref[2, :, 0:1]                                  # (1, 1)
            logit = (jnp.dot(wc, xlt, preferred_element_type=jnp.float32)
                     + jnp.dot(wd, ht, preferred_element_type=jnp.float32)
                     + bf)                                           # (1, chunk)
            out_ref[pl.ds(c, 1), :] = jax.nn.sigmoid(logit)          # lane-dense row
            return carry

        lax.fori_loop(0, n_chunks, chunk_body, 0)

    return kernel


def _pack_params(params, D: int):
    """Pack the per-layer parameters into a few stacked, kernel-layout arrays."""
    nc = len(params["cross_w"])
    nd = len(params["dense_w"])

    # Cross weights lane-major (NC, 1, D) so w_l^T feeds the MXU directly;
    # biases (NC, D, 1) for a lane-broadcast add in the transposed layout.
    if nc:
        cross_w = jnp.stack([w.reshape(1, D) for w in params["cross_w"]]
                            ).astype(jnp.float32)                    # (NC, 1, D)
        cross_b = jnp.stack([b.reshape(D, 1) for b in params["cross_b"]]
                            ).astype(jnp.float32)                    # (NC, D, 1)
    else:
        cross_w = jnp.zeros((1, 1, D), jnp.float32)
        cross_b = jnp.zeros((1, D, 1), jnp.float32)

    # Dense weights: one zero-padded resident stack (out, in), streamed bf16.
    out_dims = [int(w.shape[1]) for w in params["dense_w"]]
    in_dims = [int(w.shape[0]) for w in params["dense_w"]]
    if nd:
        mo, mi = max(out_dims), max(in_dims)
        dw = jnp.zeros((nd, mo, mi), jnp.float32)
        db = jnp.zeros((nd, mo, 1), jnp.float32)
        for i, (w, b) in enumerate(zip(params["dense_w"], params["dense_b"])):
            dw = dw.at[i, : w.shape[1], : w.shape[0]].set(w.T.astype(jnp.float32))
            db = db.at[i, : b.shape[0], 0].set(b.astype(jnp.float32))
        dw = dw.astype(jnp.bfloat16)
    else:
        dw = jnp.zeros((1, 1, 1), jnp.bfloat16)
        db = jnp.zeros((1, 1, 1), jnp.float32)

    # Final layer packed lane-major: [w_cross^T ; w_deep^T ; bias].
    deep_out = out_dims[-1] if nd else D
    F = max(D, deep_out)
    fin = jnp.zeros((3, 1, F), jnp.float32)
    fin = fin.at[0, 0, :D].set(params["wf"][:D, 0].astype(jnp.float32))
    fin = fin.at[1, 0, :deep_out].set(params["wf"][D:, 0].astype(jnp.float32))
    fin = fin.at[2, 0, 0].set(params["bf"][0].astype(jnp.float32))

    return cross_w, cross_b, dw, db, fin, out_dims


def dcn_forward_pallas(x, params, batch_tile=None, compute_chunk=512):
    """Fused DCN forward.  x: (B, num_features) float; returns (B, 1) f32."""
    B, D = x.shape
    cross_w, cross_b, dw, db, fin, out_dims = _pack_params(params, D)
    num_cross = len(params["cross_w"])

    # bf16 streaming of the activations: halves dominant HBM traffic.  This
    # cast is the only wrapper-side copy (no transpose, no batch padding).
    if x.dtype != jnp.bfloat16:
        x = x.astype(jnp.bfloat16)

    # ---- Tiling: big DMA tile over the batch, fixed-size compute sub-chunks --
    chunk = int(compute_chunk)
    if B <= chunk:
        chunk = B                               # single small block, no inner loop
        tb = B
    else:
        chunk = _round_up(chunk, 128) if chunk >= 128 else _round_up(chunk, 8)
        if batch_tile is None:
            # >=2 grid steps when the batch allows it (v7x dual-TC split);
            # cap 2048 is a sweep parameter, VMEM is not the constraint here.
            tb = min(2048, max(chunk, _round_up(pl.cdiv(B, 2), chunk)))
        else:
            tb = max(chunk, _round_up(int(batch_tile), chunk))
    n_chunks = tb // chunk
    grid = pl.cdiv(B, tb)

    def resident(a):
        nd_ = a.ndim
        return pl.BlockSpec(a.shape, lambda i, _nd=nd_: (0,) * _nd)

    in_specs = [
        pl.BlockSpec((tb, D), lambda i: (i, 0)),     # streamed, HBM-contiguous x tile
        resident(cross_w), resident(cross_b),
        resident(dw), resident(db), resident(fin),
    ]
    # Lane-dense output: one (1, chunk) row per compute chunk.
    out_spec = pl.BlockSpec((None, n_chunks, chunk), lambda i: (i, 0, 0))

    kernel = make_dcn_kernel(num_cross, out_dims, D, n_chunks, chunk)
    out = pl.pallas_call(
        kernel,
        out_shape=jax.ShapeDtypeStruct((grid, n_chunks, chunk), jnp.float32),
        grid=(grid,),
        in_specs=in_specs,
        out_specs=out_spec,
        compiler_params=pltpu.CompilerParams(
            dimension_semantics=("parallel",)),
    )(x, cross_w, cross_b, dw, db, fin)

    return out.reshape(-1)[:B].reshape(B, 1)


def dcn_forward_ref(x, params):
    """Pure-JAX f32 reference (same math) for the correctness check."""
    xl = x
    for w, b in zip(params["cross_w"], params["cross_b"]):
        xlw = xl @ w                                 # (B, 1)
        xl = x * xlw + b.T + xl
    h = x
    n = len(params["dense_w"])
    for i, (w, b) in enumerate(zip(params["dense_w"], params["dense_b"])):
        h = h @ w + b
        if i < n - 1:
            h = jnp.maximum(h, 0.0)
    combined = jnp.concatenate([xl, h], axis=1)
    logit = combined @ params["wf"] + params["bf"]
    return jax.nn.sigmoid(logit)


def init_params(key, num_features, num_cross_layers, hidden_layers):
    D = num_features
    n_keys = num_cross_layers + 2 * len(hidden_layers) + 2
    keys = iter(jax.random.split(key, max(n_keys, 2)))

    cross_w = [0.01 * jax.random.normal(next(keys), (D, 1), jnp.float32)
               for _ in range(num_cross_layers)]
    cross_b = [jnp.zeros((D, 1), jnp.float32) for _ in range(num_cross_layers)]

    dense_w, dense_b = [], []
    dims = [D] + list(hidden_layers)
    for din, dout in zip(dims[:-1], dims[1:]):
        bound = 1.0 / math.sqrt(din)
        dense_w.append(jax.random.uniform(next(keys), (din, dout), jnp.float32,
                                          minval=-bound, maxval=bound))
        dense_b.append(jax.random.uniform(next(keys), (dout,), jnp.float32,
                                          minval=-bound, maxval=bound))

    deep_out = hidden_layers[-1] if hidden_layers else D
    fin = D + deep_out
    bound = 1.0 / math.sqrt(fin)
    wf = jax.random.uniform(next(keys), (fin, 1), jnp.float32,
                            minval=-bound, maxval=bound)
    bf = jax.random.uniform(next(keys), (1,), jnp.float32,
                            minval=-bound, maxval=bound)

    return {"cross_w": cross_w, "cross_b": cross_b,
            "dense_w": dense_w, "dense_b": dense_b,
            "wf": wf, "bf": bf}


if __name__ == "__main__":
    B = 8                 # batch
    NUM_FEATURES = 16     # DCNModel.input_dim (= num_features)
    NUM_CROSS = 3         # num_cross_layers
    HIDDEN = [32, 16]     # DNN hidden_layers
    # embedding_dim is unused in DCNModel.forward (input is (B, num_features)).

    key = jax.random.PRNGKey(0)
    k_x, k_p = jax.random.split(key)
    x = jax.random.normal(k_x, (B, NUM_FEATURES), jnp.float32)
    params = init_params(k_p, NUM_FEATURES, NUM_CROSS, HIDDEN)

    out = dcn_forward_pallas(x, params)
    out = jax.block_until_ready(out)

    ref = dcn_forward_ref(x, params)
    assert out.shape == (B, 1), out.shape
    # bf16 activation / dense-weight streaming -> relaxed parity vs f32 ref.
    assert jnp.allclose(out, ref, atol=2e-2, rtol=2e-2), (out, ref)

    print("KERNEL_OK")
</pallas_src>

<mosaic_0001>
module attributes {stable_mosaic.version = 11 : i64} {
  func.func @kernel(%arg0: i32, %arg1: memref<8x16xbf16, #tpu.memory_space<vmem>>, %arg2: memref<3x1x16xf32, #tpu.memory_space<vmem>>, %arg3: memref<3x16x1xf32, #tpu.memory_space<vmem>>, %arg4: memref<2x32x32xbf16, #tpu.memory_space<vmem>>, %arg5: memref<2x32x1xf32, #tpu.memory_space<vmem>>, %arg6: memref<3x1x16xf32, #tpu.memory_space<vmem>>, %arg7: memref<1x1x8xf32, #tpu.memory_space<vmem>>) attributes {dimension_semantics = [#tpu.dimension_semantics<parallel>], iteration_bounds = array<i64: 1>, scalar_prefetch = 0 : i64, scratch_operands = 0 : i64, tpu.core_type = #tpu.core_type<tc>, window_params = [{transform_indices = @transform_0, window_bounds = array<i64: 8, 16>}, {pipeline_mode = #tpu.pipeline_mode<synchronous>, transform_indices = @transform_1, window_bounds = array<i64: 3, 1, 16>}, {pipeline_mode = #tpu.pipeline_mode<synchronous>, transform_indices = @transform_2, window_bounds = array<i64: 3, 16, 1>}, {pipeline_mode = #tpu.pipeline_mode<synchronous>, transform_indices = @transform_3, window_bounds = array<i64: 2, 32, 32>}, {pipeline_mode = #tpu.pipeline_mode<synchronous>, transform_indices = @transform_4, window_bounds = array<i64: 2, 32, 1>}, {pipeline_mode = #tpu.pipeline_mode<synchronous>, transform_indices = @transform_5, window_bounds = array<i64: 3, 1, 16>}, {transform_indices = @transform_6, window_bounds = array<i64: 1, 1, 8>}]} {
    %0 = tpu.iota {dimensions = array<i32: 0>} : vector<16x16xi32>
    %1 = tpu.iota {dimensions = array<i32: 1>} : vector<16x16xi32>
    %2 = arith.cmpi eq, %0, %1 : vector<16x16xi32>
    %cst = arith.constant 1.000000e+00 : f32
    %cst_0 = arith.constant 0.000000e+00 : f32
    %3 = vector.broadcast %cst : f32 to vector<16x16xf32>
    %4 = vector.broadcast %cst_0 : f32 to vector<16x16xf32>
    %5 = arith.select %2, %3, %4 : vector<16x16xi1>, vector<16x16xf32>
    %6 = arith.truncf %5 : vector<16x16xf32> to vector<16x16xbf16>
    %c0_i32 = arith.constant 0 : i32
    %c8_i32 = arith.constant 8 : i32
    %7 = arith.muli %c0_i32, %c8_i32 : i32
    %8 = tpu.assume_multiple %7, 8 : i32
    %9 = arith.index_cast %8 : i32 to index
    %c0 = arith.constant 0 : index
    %10 = vector.load %arg1[%9, %c0] : memref<8x16xbf16, #tpu.memory_space<vmem>>, vector<8x16xbf16>
    %cst_1 = arith.constant dense<0.000000e+00> : vector<16x8xf32>
    %11 = tpu.matmul %6, %10, %cst_1 {dimension_numbers = #tpu.dot_dimension_numbers<[1], [1], [0], [0], [0, 0, 1, 0], [], []>} : vector<16x16xbf16>, vector<8x16xbf16>, vector<16x8xf32> -> vector<16x8xf32>
    %c0_2 = arith.constant 0 : index
    %c0_3 = arith.constant 0 : index
    %c0_4 = arith.constant 0 : index
    %12 = vector.load %arg2[%c0_2, %c0_3, %c0_4] : memref<3x1x16xf32, #tpu.memory_space<vmem>>, vector<1x1x16xf32>
    %13 = vector.shape_cast %12 : vector<1x1x16xf32> to vector<1x16xf32>
    %c0_5 = arith.constant 0 : index
    %c0_6 = arith.constant 0 : index
    %c0_7 = arith.constant 0 : index
    %14 = vector.load %arg3[%c0_5, %c0_6, %c0_7] : memref<3x16x1xf32, #tpu.memory_space<vmem>>, vector<1x16x1xf32>
    %15 = vector.shape_cast %14 : vector<1x16x1xf32> to vector<16x1xf32>
    %cst_8 = arith.constant dense<0.000000e+00> : vector<1x8xf32>
    %16 = tpu.matmul %13, %11, %cst_8 {dimension_numbers = #tpu.dot_dimension_numbers<[1], [0], [0], [1], [0, 0, 1, 1], [], []>} : vector<1x16xf32>, vector<16x8xf32>, vector<1x8xf32> -> vector<1x8xf32>
    %17 = vector.broadcast %16 : vector<1x8xf32> to vector<16x8xf32>
    %18 = arith.mulf %11, %17 : vector<16x8xf32>
    %19 = vector.broadcast %15 : vector<16x1xf32> to vector<16x8xf32>
    %20 = arith.addf %18, %19 : vector<16x8xf32>
    %21 = arith.addf %20, %11 : vector<16x8xf32>
    %c1 = arith.constant 1 : index
    %c0_9 = arith.constant 0 : index
    %c0_10 = arith.constant 0 : index
    %22 = vector.load %arg2[%c1, %c0_9, %c0_10] : memref<3x1x16xf32, #tpu.memory_space<vmem>>, vector<1x1x16xf32>
    %23 = vector.shape_cast %22 : vector<1x1x16xf32> to vector<1x16xf32>
    %c1_11 = arith.constant 1 : index
    %c0_12 = arith.constant 0 : index
    %c0_13 = arith.constant 0 : index
    %24 = vector.load %arg3[%c1_11, %c0_12, %c0_13] : memref<3x16x1xf32, #tpu.memory_space<vmem>>, vector<1x16x1xf32>
    %25 = vector.shape_cast %24 : vector<1x16x1xf32> to vector<16x1xf32>
    %cst_14 = arith.constant dense<0.000000e+00> : vector<1x8xf32>
    %26 = tpu.matmul %23, %21, %cst_14 {dimension_numbers = #tpu.dot_dimension_numbers<[1], [0], [0], [1], [0, 0, 1, 1], [], []>} : vector<1x16xf32>, vector<16x8xf32>, vector<1x8xf32> -> vector<1x8xf32>
    %27 = vector.broadcast %26 : vector<1x8xf32> to vector<16x8xf32>
    %28 = arith.mulf %11, %27 : vector<16x8xf32>
    %29 = vector.broadcast %25 : vector<16x1xf32> to vector<16x8xf32>
    %30 = arith.addf %28, %29 : vector<16x8xf32>
    %31 = arith.addf %30, %21 : vector<16x8xf32>
    %c2 = arith.constant 2 : index
    %c0_15 = arith.constant 0 : index
    %c0_16 = arith.constant 0 : index
    %32 = vector.load %arg2[%c2, %c0_15, %c0_16] : memref<3x1x16xf32, #tpu.memory_space<vmem>>, vector<1x1x16xf32>
    %33 = vector.shape_cast %32 : vector<1x1x16xf32> to vector<1x16xf32>
    %c2_17 = arith.constant 2 : index
    %c0_18 = arith.constant 0 : index
    %c0_19 = arith.constant 0 : index
    %34 = vector.load %arg3[%c2_17, %c0_18, %c0_19] : memref<3x16x1xf32, #tpu.memory_space<vmem>>, vector<1x16x1xf32>
    %35 = vector.shape_cast %34 : vector<1x16x1xf32> to vector<16x1xf32>
    %cst_20 = arith.constant dense<0.000000e+00> : vector<1x8xf32>
    %36 = tpu.matmul %33, %31, %cst_20 {dimension_numbers = #tpu.dot_dimension_numbers<[1], [0], [0], [1], [0, 0, 1, 1], [], []>} : vector<1x16xf32>, vector<16x8xf32>, vector<1x8xf32> -> vector<1x8xf32>
    %37 = vector.broadcast %36 : vector<1x8xf32> to vector<16x8xf32>
    %38 = arith.mulf %11, %37 : vector<16x8xf32>
    %39 = vector.broadcast %35 : vector<16x1xf32> to vector<16x8xf32>
    %40 = arith.addf %38, %39 : vector<16x8xf32>
    %41 = arith.addf %40, %31 : vector<16x8xf32>
    %c0_21 = arith.constant 0 : index
    %c0_22 = arith.constant 0 : index
    %c0_23 = arith.constant 0 : index
    %42 = vector.load %arg4[%c0_21, %c0_22, %c0_23] : memref<2x32x32xbf16, #tpu.memory_space<vmem>>, vector<1x32x16xbf16>
    %43 = vector.shape_cast %42 : vector<1x32x16xbf16> to vector<32x16xbf16>
    %c0_24 = arith.constant 0 : index
    %c0_25 = arith.constant 0 : index
    %c0_26 = arith.constant 0 : index
    %44 = vector.load %arg5[%c0_24, %c0_25, %c0_26] : memref<2x32x1xf32, #tpu.memory_space<vmem>>, vector<1x32x1xf32>
    %45 = vector.shape_cast %44 : vector<1x32x1xf32> to vector<32x1xf32>
    %cst_27 = arith.constant dense<0.000000e+00> : vector<32x8xf32>
    %46 = tpu.matmul %43, %10, %cst_27 {dimension_numbers = #tpu.dot_dimension_numbers<[1], [1], [0], [0], [0, 0, 1, 0], [], []>} : vector<32x16xbf16>, vector<8x16xbf16>, vector<32x8xf32> -> vector<32x8xf32>
    %47 = vector.broadcast %45 : vector<32x1xf32> to vector<32x8xf32>
    %48 = arith.addf %46, %47 : vector<32x8xf32>
    %cst_28 = arith.constant 0.000000e+00 : f32
    %49 = vector.broadcast %cst_28 : f32 to vector<32x8xf32>
    %50 = arith.maximumf %48, %49 : vector<32x8xf32>
    %c1_29 = arith.constant 1 : index
    %c0_30 = arith.constant 0 : index
    %c0_31 = arith.constant 0 : index
    %51 = vector.load %arg4[%c1_29, %c0_30, %c0_31] : memref<2x32x32xbf16, #tpu.memory_space<vmem>>, vector<1x16x32xbf16>
    %52 = vector.shape_cast %51 : vector<1x16x32xbf16> to vector<16x32xbf16>
    %c1_32 = arith.constant 1 : index
    %c0_33 = arith.constant 0 : index
    %c0_34 = arith.constant 0 : index
    %53 = vector.load %arg5[%c1_32, %c0_33, %c0_34] : memref<2x32x1xf32, #tpu.memory_space<vmem>>, vector<1x16x1xf32>
    %54 = vector.shape_cast %53 : vector<1x16x1xf32> to vector<16x1xf32>
    %55 = arith.truncf %50 : vector<32x8xf32> to vector<32x8xbf16>
    %cst_35 = arith.constant dense<0.000000e+00> : vector<16x8xf32>
    %56 = tpu.matmul %52, %55, %cst_35 {dimension_numbers = #tpu.dot_dimension_numbers<[1], [0], [0], [1], [0, 0, 1, 1], [], []>} : vector<16x32xbf16>, vector<32x8xbf16>, vector<16x8xf32> -> vector<16x8xf32>
    %57 = vector.broadcast %54 : vector<16x1xf32> to vector<16x8xf32>
    %58 = arith.addf %56, %57 : vector<16x8xf32>
    %c0_36 = arith.constant 0 : index
    %c0_37 = arith.constant 0 : index
    %c0_38 = arith.constant 0 : index
    %59 = vector.load %arg6[%c0_36, %c0_37, %c0_38] : memref<3x1x16xf32, #tpu.memory_space<vmem>>, vector<1x1x16xf32>
    %60 = vector.shape_cast %59 : vector<1x1x16xf32> to vector<1x16xf32>
    %c1_39 = arith.constant 1 : index
    %c0_40 = arith.constant 0 : index
    %c0_41 = arith.constant 0 : index
    %61 = vector.load %arg6[%c1_39, %c0_40, %c0_41] : memref<3x1x16xf32, #tpu.memory_space<vmem>>, vector<1x1x16xf32>
    %62 = vector.shape_cast %61 : vector<1x1x16xf32> to vector<1x16xf32>
    %c2_42 = arith.constant 2 : index
    %c0_43 = arith.constant 0 : index
    %c0_44 = arith.constant 0 : index
    %63 = vector.load %arg6[%c2_42, %c0_43, %c0_44] : memref<3x1x16xf32, #tpu.memory_space<vmem>>, vector<1x1x1xf32>
    %64 = vector.shape_cast %63 : vector<1x1x1xf32> to vector<1x1xf32>
    %cst_45 = arith.constant dense<0.000000e+00> : vector<1x8xf32>
    %65 = tpu.matmul %60, %41, %cst_45 {dimension_numbers = #tpu.dot_dimension_numbers<[1], [0], [0], [1], [0, 0, 1, 1], [], []>} : vector<1x16xf32>, vector<16x8xf32>, vector<1x8xf32> -> vector<1x8xf32>
    %cst_46 = arith.constant dense<0.000000e+00> : vector<1x8xf32>
    %66 = tpu.matmul %62, %58, %cst_46 {dimension_numbers = #tpu.dot_dimension_numbers<[1], [0], [0], [1], [0, 0, 1, 1], [], []>} : vector<1x16xf32>, vector<16x8xf32>, vector<1x8xf32> -> vector<1x8xf32>
    %67 = arith.addf %65, %66 : vector<1x8xf32>
    %68 = vector.broadcast %64 : vector<1x1xf32> to vector<1x8xf32>
    %69 = arith.addf %67, %68 : vector<1x8xf32>
    %70 = arith.negf %69 : vector<1x8xf32>
    %71 = math.exp %70 : vector<1x8xf32>
    %cst_47 = arith.constant 1.000000e+00 : f32
    %72 = vector.broadcast %cst_47 : f32 to vector<1x8xf32>
    %73 = arith.addf %72, %71 : vector<1x8xf32>
    %74 = arith.divf %72, %73 : vector<1x8xf32>
    %c0_48 = arith.constant 0 : index
    %75 = arith.index_cast %c0_i32 : i32 to index
    %c0_49 = arith.constant 0 : index
    %76 = vector.load %arg7[%c0_48, %75, %c0_49] : memref<1x1x8xf32, #tpu.memory_space<vmem>>, vector<1x1x8xf32>
    %77 = vector.shape_cast %76 : vector<1x1x8xf32> to vector<1x8xf32>
    %78 = vector.shape_cast %74 : vector<1x8xf32> to vector<1x1x8xf32>
    tpu.vector_store %arg7[%c0_48, %75, %c0_49], %78 {strides = array<i32>} : memref<1x1x8xf32, #tpu.memory_space<vmem>>, vector<1x1x8xf32>,
    %c1_i32 = arith.constant 1 : i32
    return
  }
  func.func @transform_0(%arg0: i32) -> (i32, i32) {
    %c0_i32 = arith.constant 0 : i32
    %c0_i32_0 = arith.constant 0 : i32
    return %arg0, %c0_i32 : i32, i32
  }
  func.func @transform_1(%arg0: i32) -> (i32, i32, i32) {
    %c0_i32 = arith.constant 0 : i32
    %c0_i32_0 = arith.constant 0 : i32
    %c0_i32_1 = arith.constant 0 : i32
    %c0_i32_2 = arith.constant 0 : i32
    return %c0_i32, %c0_i32_0, %c0_i32_1 : i32, i32, i32
  }
  func.func @transform_2(%arg0: i32) -> (i32, i32, i32) {
    %c0_i32 = arith.constant 0 : i32
    %c0_i32_0 = arith.constant 0 : i32
    %c0_i32_1 = arith.constant 0 : i32
    %c0_i32_2 = arith.constant 0 : i32
    return %c0_i32, %c0_i32_0, %c0_i32_1 : i32, i32, i32
  }
  func.func @transform_3(%arg0: i32) -> (i32, i32, i32) {
    %c0_i32 = arith.constant 0 : i32
    %c0_i32_0 = arith.constant 0 : i32
    %c0_i32_1 = arith.constant 0 : i32
    %c0_i32_2 = arith.constant 0 : i32
    return %c0_i32, %c0_i32_0, %c0_i32_1 : i32, i32, i32
  }
  func.func @transform_4(%arg0: i32) -> (i32, i32, i32) {
    %c0_i32 = arith.constant 0 : i32
    %c0_i32_0 = arith.constant 0 : i32
    %c0_i32_1 = arith.constant 0 : i32
    %c0_i32_2 = arith.constant 0 : i32
    return %c0_i32, %c0_i32_0, %c0_i32_1 : i32, i32, i32
  }
  func.func @transform_5(%arg0: i32) -> (i32, i32, i32) {
    %c0_i32 = arith.constant 0 : i32
    %c0_i32_0 = arith.constant 0 : i32
    %c0_i32_1 = arith.constant 0 : i32
    %c0_i32_2 = arith.constant 0 : i32
    return %c0_i32, %c0_i32_0, %c0_i32_1 : i32, i32, i32
  }
  func.func @transform_6(%arg0: i32) -> (i32, i32, i32) {
    %c0_i32 = arith.constant 0 : i32
    %c0_i32_0 = arith.constant 0 : i32
    %c0_i32_1 = arith.constant 0 : i32
    return %arg0, %c0_i32, %c0_i32_0 : i32, i32, i32
  }
}

</mosaic_0001>

<bundles_post_ra>
// kernel: tpu_custom_call.1
= control target key start
LH: loop header
LB: loop body
LE: loop exit
PB: predicated region body
PF: predicated region fallthrough
CT: control target
= control target key end

     0   :  { %vm36_vm0 = vcmask 130048   ;;  %v25_v1 = vlaneseq  ;;  %v863_v2 = vmov 0.0   ;;  %vm864_vm1 = vmmov 0   ;;  %s1030_s0 = inlined_call_operand.vmem [shape: bf16[8,16], index: 0, kind: input, shape index: {}]   ;;  %s1031_s1 = inlined_call_operand.vmem [shape: f32[3,1,16], index: 1, kind: input, shape index: {}]   ;;  %s1032_s2 = inlined_call_operand.vmem [shape: f32[3,16,1], index: 2, kind: input, shape index: {}]   ;;  %s1033_s3 = inlined_call_operand.vmem [shape: bf16[2,32,32], index: 3, kind: input, shape index: {}]   ;;  %s1034_s4 = inlined_call_operand.vmem [shape: f32[2,32,1], index: 4, kind: input, shape index: {}]   ;;  %s1035_s5 = inlined_call_operand.vmem [shape: f32[3,1,16], index: 5, kind: input, shape index: {}]   ;;  %s1036_s6 = inlined_call_operand.hbm [shape: f32[1,1,8], index: 6, kind: output, shape index: {}]  }
   0x1   :  { %v35_v0 = vld [vmem:[%s1030_s0] sm:$0xf]  ;;  %772 = vmatprep.subr.bf16.mxu0 %v863_v2  ;;  %774 = vmatprep.mubr.msk.bf16.mxu0 %vm864_vm1, %v863_v2 }
   0x2   :  { %v41_v3 = vsel %vm36_vm0, %v35_v0, 0  ;;  %v26_v4 = vshrl.u32 %v25_v1, 7  ;;  %v29_v5 = vand.u32 127, %v25_v1  ;;  %778 = vmatprep.subr.mxu1 %v863_v2  ;;  %782 = vmatprep.mubr.msk.f32.mxu1 %vm864_vm1, %v863_v2 }
   0x3   :  { %773 = vmatpush3.bf16.xpose.msra.mxu0 %v41_v3 }
   0x4   :  { %827 = vmatprep.subr.msk.bf16.mxu0 %vm36_vm0, %v35_v0 }
   0x5   :  { %11 = vsyncpa [#allocation3], 0  ;;  %v27_v6 = vadd.s32 8, %v26_v4  ;;  %vm30_vm2 = vcmp.eq.s32.totalorder %v26_v4, %v29_v5  ;;  %v834_v10 = vld [vmem:[%s1033_s3] sm:$0xff]   ;;  %v835_v11 = vld [vmem:[%s1033_s3 + $0x8] sm:$0xff]   ;;  %v865_v13 = vmov 0  }
   0x6   :  { %v32_v7 = vsel %vm30_vm2, 1.0, %v863_v2  ;;  %v86_v12 = vld [vmem:[%s1032_s2 + $0x8] sm:$0xff]  ;;  %832 = vset.pattern.permute.xlu0 %v865_v13  ;;  %833 = vset.pattern.permute.xlu1 %v865_v13  ;;  %v728_v14 = vld [vmem:[%s1032_s2 + $0x18] sm:$0xff]  ;;  %v85_v15 = vld [vmem:[%s1032_s2] sm:$0xff]  ;;  %v980_v31 = vsub.s32 0, %v26_v4  ;;  %vm496_vm4 = vcmask 261120  }
   0x7   :  { %vm31_vm3 = vcmp.eq.s32.totalorder %v27_v6, %v29_v5  ;;  %173 = vperm.xlu0 %832, %v86_v12   ;;  %271 = vperm.xlu1 %833, %v728_v14   ;;  %v727_v16 = vld [vmem:[%s1032_s2 + $0x10] sm:$0xff]  ;;  %v383_v18 = vld [vmem:[%s1034_s4 + $0x18] sm:$0xff]  ;;  %v380_v19 = vld [vmem:[%s1034_s4] sm:$0xff]  ;;  %vm708_vm5 = vcmask 57344  }
   0x8   :  { %v33_v8 = vsel %vm31_vm3, 1.0, %v863_v2  ;;  %v382_v17 = vld [vmem:[%s1034_s4 + $0x10] sm:$0xff]  ;;  %v381_v20 = vld [vmem:[%s1034_s4 + $0x8] sm:$0xff]  ;;  %v740_v22 = vld [vmem:[%s1034_s4 + $0x20] sm:$0xff] }
   0x9   :  { %v34_v9 = vpack.c.bf16 %v33_v8, %v32_v7  ;;  %v741_v21 = vld [vmem:[%s1034_s4 + $0x28] sm:$0xff]  ;;  %v745_v23 = vld [vmem:[%s1035_s5 + $0x2] sm:$0x1]  ;;  %v84_v27 = vld [vmem:[%s1031_s1] sm:$0x1] }
   0xa   :  { %v732_v29 = vld [vmem:[%s1032_s2 + $0x28] sm:$0xff]  ;;  %v731_v30 = vld [vmem:[%s1032_s2 + $0x20] sm:$0xff] }
   0xb   :  { %775 = vmatmul.mubr.msk.bf16.vlgmr.msra.gmra.mxu0 %vm36_vm0, %v34_v9  ;;  %168 = vperm.xlu0 %832, %v85_v15   ;;  %v726_v43 = vld [vmem:[%s1031_s1 + $0x1] sm:$0x1]  ;;  %v730_v6 = vld [vmem:[%s1031_s1 + $0x2] sm:$0x1] }
   0xc   :  { %800 = vmatpush3.bf16.xpose.msra.mxu0 %v41_v3  ;;  %801 = vmatprep.mubr.msk.bf16.mxu0 %vm36_vm0, %v834_v10 }
   0xd   :  { %813 = vmatprep.subr.mxu0 %v863_v2  ;;  %266 = vperm.xlu1 %833, %v727_v16  }
   0xf   :  { %396 = vperm.xlu0 %832, %v382_v17  }
  0x11   :  { %401 = vperm.xlu1 %833, %v383_v18  }
  0x13   :  { %802 = vmatmul.mubr.msk.bf16.vlgmr.msra.gmra.mxu0 %vm36_vm0, %v835_v11  ;;  %386 = vperm.xlu0 %832, %v380_v19   ;;  %v836_v11 = vld [vmem:[%s1033_s3 + $0x10] sm:$0xff]  }
  0x14   :  { %817 = vmatprep.mubr.msk.f32.mxu0 %vm864_vm1, %v863_v2 }
  0x15   :  { %391 = vperm.xlu1 %833, %v381_v20  }
  0x17   :  { %488 = vperm.xlu0 %832, %v741_v21  }
  0x19   :  { %369 = vperm.xlu1 %833, %v732_v29  }
  0x1b   :  { %483 = vperm.xlu0 %832, %v740_v22  }
  0x1d   :  { %364 = vperm.xlu1 %833, %v731_v30  }
  0x1f   :  { %694 = vperm.xlu0 %832, %v745_v23  }
  0x82   :  { %v174_v32 = vpop.permute.xlu0 %173  ;;  %v272_v44 = vpop.permute.xlu1 %271 }
  0x86   :  { %v169_v38 = vpop.permute.xlu0 %168 }
  0x88   :  { %v267_v45 = vpop.permute.xlu1 %266 }
  0x8a   :  { %v397_v49 = vpop.permute.xlu0 %396 }
  0x8c   :  { %v402_v48 = vpop.permute.xlu1 %401 }
  0x8e   :  { %v387_v62 = vpop.permute.xlu0 %386 }
  0x90   :  { %v392_v58 = vpop.permute.xlu1 %391 }
  0x92   :  { %v489_v15 = vpop.permute.xlu0 %488 }
  0x94   :  { %v370_v16 = vpop.permute.xlu1 %369 }
  0x96   :  { %v484_v22 = vpop.permute.xlu0 %483 }
  0xcb   :  { %v960_v24 = vpop.f32.mrf.mxu0 }
  0xcd   :  { %v776_v25 = vpop.f32.mrf.mxu0 }
  0xcf   :  { %v962_v26 = vpop.f32.mrf.mxu0 }
  0xd0   :  { %779 = vmatpush3.msra.mxu1 %v962_v26 }
  0xd1   :  { %v777_v28 = vpop.f32.mrf.mxu0  ;;  %780 = vmatprep.subr.mxu1 %v863_v2 }
  0xd2   :  { %781 = vmatpush3.msra.mxu1 %v960_v24 }
  0xd3   :  { %783 = vmatmul.mubr.msk.f32.vlgmr.msra.gmra.mxu1 %vm36_vm0, %v84_v27  ;;  %785 = vmatprep.subr.mxu1 %v863_v2  ;;  %v803_v46 = vpop.f32.mrf.mxu0  ;;  %v365_v27 = vpop.permute.xlu1 %364 }
  0xd4   :  { %789 = vmatprep.mubr.msk.f32.mxu1 %vm864_vm1, %v863_v2  ;;  %v463_v53 = vadd.f32 %v803_v46, %v397_v49 }
  0xd5   :  { %v454_v47 = vpop.f32.mrf.mxu0 }
  0xd6   :  { %v471_v63 = vmax.f32 %v463_v53, 0.0  ;;  %v455_v0 = vadd.f32 %v454_v47, %v387_v62 }
  0xd7   :  { %v804_v50 = vpop.f32.mrf.mxu0 }
  0xd8   :  { %v466_v55 = vadd.f32 %v804_v50, %v402_v48  ;;  %v469_v7 = vmax.f32 %v455_v0, 0.0 }
  0xd9   :  { %v457_v59 = vpop.f32.mrf.mxu0 }
  0xda   :  { %v472_v1 = vmax.f32 %v466_v55, 0.0  ;;  %v458_v3 = vadd.f32 %v457_v59, %v392_v58 }
  0xdc   :  { %v480_v8 = vpack.c.bf16 %v472_v1, %v471_v63  ;;  %v470_v9 = vmax.f32 %v458_v3, 0.0 }
  0xde   :  { %v479_v10 = vpack.c.bf16 %v470_v9, %v469_v7 }
 0x193   :  { %v156_v33 = vpop.f32.mrf.mxu1 }
 0x194   :  { %v163_v34 = vrot.slane %v156_v33, %v980_v31 }
 0x195   :  { %v784_v35 = vpop.f32.mrf.mxu1 }
 0x196   :  { %v164_v36 = vmul.f32 %v163_v34, %v960_v24  ;;  %v165_v37 = vmul.f32 %v163_v34, %v962_v26  ;;  %v695_v35 = vpop.permute.xlu0 %694 }
 0x198   :  { %v176_v39 = vadd.f32 %v169_v38, %v164_v36  ;;  %v177_v40 = vadd.f32 %v174_v32, %v165_v37  ;;  %v744_v32 = vld [vmem:[%s1035_s5 + $0x1] sm:$0x1]  ;;  %v700_v38 = vrot.slane %v695_v35, %v980_v31 }
 0x19a   :  { %v179_v41 = vadd.f32 %v177_v40, %v962_v26  ;;  %v178_v42 = vadd.f32 %v176_v39, %v960_v24 }
 0x19c   :  { %786 = vmatpush3.msra.mxu1 %v179_v41 }
 0x19d   :  { %787 = vmatprep.subr.mxu1 %v863_v2 }
 0x19e   :  { %788 = vmatpush3.msra.mxu1 %v178_v42 }
 0x19f   :  { %790 = vmatmul.mubr.msk.f32.vlgmr.msra.gmra.mxu1 %vm36_vm0, %v726_v43  ;;  %792 = vmatprep.subr.mxu1 %v863_v2 }
 0x1a0   :  { %796 = vmatprep.mubr.msk.f32.mxu1 %vm864_vm1, %v863_v2 }
 0x25f   :  { %v254_v51 = vpop.f32.mrf.mxu1 }
 0x260   :  { %v261_v52 = vrot.slane %v254_v51, %v980_v31 }
 0x261   :  { %v791_v54 = vpop.f32.mrf.mxu1 }
 0x262   :  { %v262_v56 = vmul.f32 %v261_v52, %v960_v24  ;;  %v263_v57 = vmul.f32 %v261_v52, %v962_v26 }
 0x264   :  { %v274_v60 = vadd.f32 %v267_v45, %v262_v56  ;;  %v275_v61 = vadd.f32 %v272_v44, %v263_v57 }
 0x266   :  { %v277_v4 = vadd.f32 %v275_v61, %v179_v41  ;;  %v276_v5 = vadd.f32 %v274_v60, %v178_v42 }
 0x268   :  { %793 = vmatpush3.msra.mxu1 %v277_v4 }
 0x269   :  { %794 = vmatprep.subr.mxu1 %v863_v2 }
 0x26a   :  { %795 = vmatpush3.msra.mxu1 %v276_v5 }
 0x26b   :  { %797 = vmatmul.mubr.msk.f32.vlgmr.msra.gmra.mxu1 %vm36_vm0, %v730_v6  ;;  %805 = vmatprep.subr.bf16.mxu1 %v863_v2 }
 0x26c   :  { %806 = vmatpush3.bf16.msra.mxu1 %v480_v8  ;;  %809 = vmatprep.mubr.msk.bf16.mxu1 %vm864_vm1, %v863_v2 }
 0x26d   :  { %807 = vmatprep.subr.bf16.mxu1 %v863_v2 }
 0x270   :  { %808 = vmatpush3.bf16.msra.mxu1 %v479_v10 }
 0x273   :  { %810 = vmatmul.mubr.msk.bf16.vlgmr.msra.gmra.mxu1 %vm496_vm4, %v836_v11 }
 0x32b   :  { %v352_v12 = vpop.f32.mrf.mxu1 }
 0x32c   :  { %v359_v14 = vrot.slane %v352_v12, %v980_v31 }
 0x32d   :  { %v798_v13 = vpop.f32.mrf.mxu1 }
 0x32e   :  { %v361_v18 = vmul.f32 %v359_v14, %v962_v26  ;;  %v360_v20 = vmul.f32 %v359_v14, %v960_v24  ;;  %v541_v26 = vld [vmem:[%s1035_s5] sm:$0x1]  ;;  %s866_s5 = smov [#allocation2]  }
 0x32f   :  { %s716_s11 = sshll.u32 %s866_s5, 4  ;;  %s717_s11 = int_to_ptr.vmem [resolvable:$true] %s716_s11 }
 0x330   :  { %v373_v23 = vadd.f32 %v370_v16, %v361_v18  ;;  %v372_v29 = vadd.f32 %v365_v27, %v360_v20  ;;  %s841_s12 = scalar_lea.vmem %s717_s11, 16  ;;  %s845_s13 = scalar_lea.vmem %s717_s11, 32 }
 0x331   :  { %p842_p0 = scmp.ne.s32.totalorder %s717_s11, %s841_s12  ;;  %p846_p1 = scmp.lt.s32.totalorder %s717_s11, %s717_s11 }
 0x332   :  { %v375_v33 = vadd.f32 %v373_v23, %v277_v4  ;;  %v374_v24 = vadd.f32 %v372_v29, %v276_v5  ;;  %p847_p2 = scmp.lt.s32.totalorder %s845_s13, %s841_s12 }
 0x333   :  { %v534_v17 = vpop.f32.mrf.mxu1 }
 0x334   :  { %v535_v30 = vadd.f32 %v534_v17, %v484_v22  ;;  %p848_p3 = por %p847_p2, %p846_p1 }
 0x335   :  { %v811_v19 = vpop.f32.mrf.mxu1 }
 0x336   :  { %p849_p4 = pnand %p848_p3, %p842_p0 }
 0x337   :  { %v537_v21 = vpop.f32.mrf.mxu1 }
 0x338   :  { %v538_v25 = vadd.f32 %v537_v21, %v489_v15 }
 0x339   :  { %v812_v28 = vpop.f32.mrf.mxu1 }
 0x33a   :  { %814 = vmatpush3.msra.mxu0 %v538_v25 }
 0x33b   :  { %815 = vmatprep.subr.mxu0 %v863_v2 }
 0x33c   :  { %816 = vmatpush3.msra.mxu0 %v535_v30 }
 0x33d   :  { %818 = vmatmul.mubr.msk.f32.vlgmr.msra.gmra.mxu0 %vm36_vm0, %v744_v32  ;;  %820 = vmatprep.subr.mxu0 %v863_v2 }
 0x33e   :  { %821 = vmatpush3.msra.mxu0 %v375_v33  ;;  %824 = vmatprep.mubr.msk.f32.mxu0 %vm864_vm1, %v863_v2 }
 0x33f   :  { %822 = vmatprep.subr.mxu0 %v863_v2 }
 0x340   :  { %823 = vmatpush3.msra.mxu0 %v374_v24 }
 0x341   :  { %825 = vmatmul.mubr.msk.f32.vlgmr.msra.gmra.mxu0 %vm36_vm0, %v541_v26 }
 0x3fd   :  { %v615_v34 = vpop.f32.mrf.mxu0 }
 0x3ff   :  { %v819_v36 = vpop.f32.mrf.mxu0 }
 0x401   :  { %v688_v37 = vpop.f32.mrf.mxu0 }
 0x402   :  { %v689_v39 = vadd.f32 %v688_v37, %v615_v34 }
 0x403   :  { %v826_v40 = vpop.f32.mrf.mxu0 }
 0x404   :  { %v701_v41 = vadd.f32 %v700_v38, %v689_v39 }
 0x406   :  { %v748_v42 = vmul.f32 -1.442695, %v701_v41 }
 0x408   :  { %837 = vpow2.f32 %v748_v42 }
 0x415   :  { %v838_v43 = vpop.eup %837 }
 0x416   :  { %v705_v44 = vadd.f32 1.0, %v838_v43 }
 0x418   :  { %839 = vrcp.f32 %v705_v44 }
 0x425   :  { %v840_v2 = vpop.eup %839 }
 0x426   :  { %709 = vst.msk [vmem:[#allocation2] sm:$0x1] %vm708_vm5, %v840_v2 }
 0x427   :  { %852 = shalt.err (!%p849_p4)
}
 0x428   :  { %719 = dma.vmem_to_hbm [thread:$0]  %s717_s11, 16, %s1036_s6, [#allocation3]  }
 0x429   :  { %861 = dma.done.wait [#allocation3], 16  }
 0x42a   :  { %862 = vsyncadd [#allocation3], 4294967280 }
 0x42b   :  { %723 = vsyncpa [#allocation3], 1 }

</bundles_post_ra>
